<compile_context>
chip_gen: v5e
topology: v5e:2x2
jax: 0.10.0
libtpu: 0.0.40
codegen_flags: <defaults>
</compile_context>

<pallas_src>
import functools

import jax
import jax.numpy as jnp
from jax.experimental import pallas as pl
from jax.experimental.pallas import tpu as pltpu


def _mlp_kernel(x_ref, p_ref, o_ref, *, n_hidden):
    # x_ref : (TS, 128) f32 VMEM  -- batch packed on sublanes + lanes
    # p_ref : (3*H + 1,) f32 SMEM -- [w1(0:H) | b1(H:2H) | w2(2H:3H) | b2]
    # o_ref : (TS, 128) f32 VMEM
    x = x_ref[...]
    acc = jnp.zeros_like(x)
    # Static unrolled loop over hidden units; SMEM scalars broadcast for free
    # inside VALU ops -> pure VPU streaming map, no XLU, no MXU.
    for j in range(n_hidden):
        w1j = p_ref[j]
        b1j = p_ref[n_hidden + j]
        w2j = p_ref[2 * n_hidden + j]
        acc = acc + w2j * jnp.maximum(w1j * x + b1j, 0.0)
    o_ref[...] = (acc + p_ref[3 * n_hidden]).astype(o_ref.dtype)


def pack_params(w1, b1, w2, b2):
    """Pack all parameters into one flat f32 slab [w1 | b1 | w2 | b2].

    Hoisted out of the per-forward hot path: call once, reuse across forwards.
    """
    n_hidden = w1.shape[1]
    return jnp.concatenate(
        [
            w1.reshape(n_hidden),
            b1.reshape(n_hidden),
            w2.reshape(n_hidden),
            b2.reshape(1),
        ]
    ).astype(jnp.float32)  # (3H + 1,)


def net_forward(x, packed_params):
    """Pallas TPU forward of Net(n_feature=1, n_hidden=H, n_output=1)."""
    B, F = x.shape
    assert F == 1, "kernel is specialized to the Net(1, H, 1) spec"
    n_hidden = (packed_params.shape[0] - 1) // 3

    # Dense (sublane, lane) batch layout: 128 batch elements per row.
    rows_needed = pl.cdiv(B, 128)
    # Tile rows: >=8 (sublane granularity), <=256 (32K elems, 128 KiB/buffer);
    # for large batches target ~2 grid steps so v7x's two TCs both get work,
    # while each step stays big enough to amortize the ~0.35 us step overhead.
    TS = min(256, max(8, 8 * pl.cdiv(pl.cdiv(rows_needed, 2), 8)))
    R = TS * pl.cdiv(rows_needed, TS)          # padded row count (multiple of TS)
    Bp = R * 128

    x_flat = x.reshape(B).astype(jnp.float32)
    x2d = jnp.pad(x_flat, (0, Bp - B)).reshape(R, 128)

    out = pl.pallas_call(
        functools.partial(_mlp_kernel, n_hidden=n_hidden),
        out_shape=jax.ShapeDtypeStruct((R, 128), jnp.float32),
        grid=(R // TS,),
        in_specs=[
            pl.BlockSpec((TS, 128), lambda i: (i, 0)),                 # batch tile
            pl.BlockSpec(memory_space=pltpu.MemorySpace.SMEM),         # params slab
        ],
        out_specs=pl.BlockSpec((TS, 128), lambda i: (i, 0)),
        compiler_params=pltpu.CompilerParams(
            dimension_semantics=("parallel",)),                        # shards over TCs
    )(x2d, packed_params)

    # Padded lanes hold garbage (w2.relu(b1)+b2) but are sliced off here.
    return out.reshape(Bp)[:B].reshape(B, 1)


def init_params(key, n_feature, n_hidden, n_output):
    """Deterministic init matching torch.nn.Linear's U(-1/sqrt(fan_in), ...)."""
    k1, k2, k3, k4 = jax.random.split(key, 4)
    bound1 = 1.0 / jnp.sqrt(jnp.float32(n_feature))
    bound2 = 1.0 / jnp.sqrt(jnp.float32(n_hidden))
    w1 = jax.random.uniform(k1, (n_feature, n_hidden), jnp.float32, -bound1, bound1)
    b1 = jax.random.uniform(k2, (1, n_hidden), jnp.float32, -bound1, bound1)
    w2 = jax.random.uniform(k3, (n_hidden, n_output), jnp.float32, -bound2, bound2)
    b2 = jax.random.uniform(k4, (1, n_output), jnp.float32, -bound2, bound2)
    return w1, b1, w2, b2


if __name__ == "__main__":
    n_feature, n_hidden, n_output = 1, 32, 1
    B = 100

    key = jax.random.PRNGKey(0)
    w1, b1, w2, b2 = init_params(key, n_feature, n_hidden, n_output)

    # Pack parameters ONCE outside the forward hot path.
    params = pack_params(w1, b1, w2, b2)

    # Same input as the reference script: linspace(-1, 1, 100).reshape(100, 1)
    x = jnp.linspace(-1.0, 1.0, B, dtype=jnp.float32).reshape(B, n_feature)

    fwd = jax.jit(net_forward)   # pad/reshape plumbing fuses into one dispatch
    y = fwd(x, params)
    jax.block_until_ready(y)

    # Reference check in plain JAX
    y_ref = jnp.maximum(x @ w1 + b1, 0.0) @ w2 + b2
    assert y.shape == (B, n_output)
    assert jnp.allclose(y, y_ref, atol=1e-5), "mismatch vs reference"

    print("KERNEL_OK")
</pallas_src>

<mosaic_0001>
module attributes {stable_mosaic.version = 11 : i64} {
  func.func @_mlp_kernel(%arg0: i32, %arg1: memref<8x128xf32, #tpu.memory_space<vmem>>, %arg2: memref<97xf32, #tpu.memory_space<smem>>, %arg3: memref<8x128xf32, #tpu.memory_space<vmem>>) attributes {dimension_semantics = [#tpu.dimension_semantics<parallel>], iteration_bounds = array<i64: 1>, scalar_prefetch = 0 : i64, scratch_operands = 0 : i64, tpu.core_type = #tpu.core_type<tc>, window_params = [{transform_indices = @transform_0, window_bounds = array<i64: 8, 128>}, {transform_indices = @transform_1, window_bounds = array<i64: 97>}, {transform_indices = @transform_2, window_bounds = array<i64: 8, 128>}]} {
    %c0 = arith.constant 0 : index
    %c0_0 = arith.constant 0 : index
    %0 = vector.load %arg1[%c0, %c0_0] : memref<8x128xf32, #tpu.memory_space<vmem>>, vector<8x128xf32>
    %cst = arith.constant 0.000000e+00 : f32
    %1 = vector.broadcast %cst : f32 to vector<8x128xf32>
    %c0_1 = arith.constant 0 : index
    %2 = memref.load %arg2[%c0_1] : memref<97xf32, #tpu.memory_space<smem>>
    %c32 = arith.constant 32 : index
    %3 = memref.load %arg2[%c32] : memref<97xf32, #tpu.memory_space<smem>>
    %c64 = arith.constant 64 : index
    %4 = memref.load %arg2[%c64] : memref<97xf32, #tpu.memory_space<smem>>
    %5 = vector.broadcast %2 : f32 to vector<8x128xf32>
    %6 = arith.mulf %5, %0 : vector<8x128xf32>
    %7 = vector.broadcast %3 : f32 to vector<8x128xf32>
    %8 = arith.addf %6, %7 : vector<8x128xf32>
    %cst_2 = arith.constant 0.000000e+00 : f32
    %9 = vector.broadcast %cst_2 : f32 to vector<8x128xf32>
    %10 = arith.maximumf %8, %9 : vector<8x128xf32>
    %11 = vector.broadcast %4 : f32 to vector<8x128xf32>
    %12 = arith.mulf %11, %10 : vector<8x128xf32>
    %13 = arith.addf %1, %12 : vector<8x128xf32>
    %c1 = arith.constant 1 : index
    %14 = memref.load %arg2[%c1] : memref<97xf32, #tpu.memory_space<smem>>
    %c33 = arith.constant 33 : index
    %15 = memref.load %arg2[%c33] : memref<97xf32, #tpu.memory_space<smem>>
    %c65 = arith.constant 65 : index
    %16 = memref.load %arg2[%c65] : memref<97xf32, #tpu.memory_space<smem>>
    %17 = vector.broadcast %14 : f32 to vector<8x128xf32>
    %18 = arith.mulf %17, %0 : vector<8x128xf32>
    %19 = vector.broadcast %15 : f32 to vector<8x128xf32>
    %20 = arith.addf %18, %19 : vector<8x128xf32>
    %cst_3 = arith.constant 0.000000e+00 : f32
    %21 = vector.broadcast %cst_3 : f32 to vector<8x128xf32>
    %22 = arith.maximumf %20, %21 : vector<8x128xf32>
    %23 = vector.broadcast %16 : f32 to vector<8x128xf32>
    %24 = arith.mulf %23, %22 : vector<8x128xf32>
    %25 = arith.addf %13, %24 : vector<8x128xf32>
    %c2 = arith.constant 2 : index
    %26 = memref.load %arg2[%c2] : memref<97xf32, #tpu.memory_space<smem>>
    %c34 = arith.constant 34 : index
    %27 = memref.load %arg2[%c34] : memref<97xf32, #tpu.memory_space<smem>>
    %c66 = arith.constant 66 : index
    %28 = memref.load %arg2[%c66] : memref<97xf32, #tpu.memory_space<smem>>
    %29 = vector.broadcast %26 : f32 to vector<8x128xf32>
    %30 = arith.mulf %29, %0 : vector<8x128xf32>
    %31 = vector.broadcast %27 : f32 to vector<8x128xf32>
    %32 = arith.addf %30, %31 : vector<8x128xf32>
    %cst_4 = arith.constant 0.000000e+00 : f32
    %33 = vector.broadcast %cst_4 : f32 to vector<8x128xf32>
    %34 = arith.maximumf %32, %33 : vector<8x128xf32>
    %35 = vector.broadcast %28 : f32 to vector<8x128xf32>
    %36 = arith.mulf %35, %34 : vector<8x128xf32>
    %37 = arith.addf %25, %36 : vector<8x128xf32>
    %c3 = arith.constant 3 : index
    %38 = memref.load %arg2[%c3] : memref<97xf32, #tpu.memory_space<smem>>
    %c35 = arith.constant 35 : index
    %39 = memref.load %arg2[%c35] : memref<97xf32, #tpu.memory_space<smem>>
    %c67 = arith.constant 67 : index
    %40 = memref.load %arg2[%c67] : memref<97xf32, #tpu.memory_space<smem>>
    %41 = vector.broadcast %38 : f32 to vector<8x128xf32>
    %42 = arith.mulf %41, %0 : vector<8x128xf32>
    %43 = vector.broadcast %39 : f32 to vector<8x128xf32>
    %44 = arith.addf %42, %43 : vector<8x128xf32>
    %cst_5 = arith.constant 0.000000e+00 : f32
    %45 = vector.broadcast %cst_5 : f32 to vector<8x128xf32>
    %46 = arith.maximumf %44, %45 : vector<8x128xf32>
    %47 = vector.broadcast %40 : f32 to vector<8x128xf32>
    %48 = arith.mulf %47, %46 : vector<8x128xf32>
    %49 = arith.addf %37, %48 : vector<8x128xf32>
    %c4 = arith.constant 4 : index
    %50 = memref.load %arg2[%c4] : memref<97xf32, #tpu.memory_space<smem>>
    %c36 = arith.constant 36 : index
    %51 = memref.load %arg2[%c36] : memref<97xf32, #tpu.memory_space<smem>>
    %c68 = arith.constant 68 : index
    %52 = memref.load %arg2[%c68] : memref<97xf32, #tpu.memory_space<smem>>
    %53 = vector.broadcast %50 : f32 to vector<8x128xf32>
    %54 = arith.mulf %53, %0 : vector<8x128xf32>
    %55 = vector.broadcast %51 : f32 to vector<8x128xf32>
    %56 = arith.addf %54, %55 : vector<8x128xf32>
    %cst_6 = arith.constant 0.000000e+00 : f32
    %57 = vector.broadcast %cst_6 : f32 to vector<8x128xf32>
    %58 = arith.maximumf %56, %57 : vector<8x128xf32>
    %59 = vector.broadcast %52 : f32 to vector<8x128xf32>
    %60 = arith.mulf %59, %58 : vector<8x128xf32>
    %61 = arith.addf %49, %60 : vector<8x128xf32>
    %c5 = arith.constant 5 : index
    %62 = memref.load %arg2[%c5] : memref<97xf32, #tpu.memory_space<smem>>
    %c37 = arith.constant 37 : index
    %63 = memref.load %arg2[%c37] : memref<97xf32, #tpu.memory_space<smem>>
    %c69 = arith.constant 69 : index
    %64 = memref.load %arg2[%c69] : memref<97xf32, #tpu.memory_space<smem>>
    %65 = vector.broadcast %62 : f32 to vector<8x128xf32>
    %66 = arith.mulf %65, %0 : vector<8x128xf32>
    %67 = vector.broadcast %63 : f32 to vector<8x128xf32>
    %68 = arith.addf %66, %67 : vector<8x128xf32>
    %cst_7 = arith.constant 0.000000e+00 : f32
    %69 = vector.broadcast %cst_7 : f32 to vector<8x128xf32>
    %70 = arith.maximumf %68, %69 : vector<8x128xf32>
    %71 = vector.broadcast %64 : f32 to vector<8x128xf32>
    %72 = arith.mulf %71, %70 : vector<8x128xf32>
    %73 = arith.addf %61, %72 : vector<8x128xf32>
    %c6 = arith.constant 6 : index
    %74 = memref.load %arg2[%c6] : memref<97xf32, #tpu.memory_space<smem>>
    %c38 = arith.constant 38 : index
    %75 = memref.load %arg2[%c38] : memref<97xf32, #tpu.memory_space<smem>>
    %c70 = arith.constant 70 : index
    %76 = memref.load %arg2[%c70] : memref<97xf32, #tpu.memory_space<smem>>
    %77 = vector.broadcast %74 : f32 to vector<8x128xf32>
    %78 = arith.mulf %77, %0 : vector<8x128xf32>
    %79 = vector.broadcast %75 : f32 to vector<8x128xf32>
    %80 = arith.addf %78, %79 : vector<8x128xf32>
    %cst_8 = arith.constant 0.000000e+00 : f32
    %81 = vector.broadcast %cst_8 : f32 to vector<8x128xf32>
    %82 = arith.maximumf %80, %81 : vector<8x128xf32>
    %83 = vector.broadcast %76 : f32 to vector<8x128xf32>
    %84 = arith.mulf %83, %82 : vector<8x128xf32>
    %85 = arith.addf %73, %84 : vector<8x128xf32>
    %c7 = arith.constant 7 : index
    %86 = memref.load %arg2[%c7] : memref<97xf32, #tpu.memory_space<smem>>
    %c39 = arith.constant 39 : index
    %87 = memref.load %arg2[%c39] : memref<97xf32, #tpu.memory_space<smem>>
    %c71 = arith.constant 71 : index
    %88 = memref.load %arg2[%c71] : memref<97xf32, #tpu.memory_space<smem>>
    %89 = vector.broadcast %86 : f32 to vector<8x128xf32>
    %90 = arith.mulf %89, %0 : vector<8x128xf32>
    %91 = vector.broadcast %87 : f32 to vector<8x128xf32>
    %92 = arith.addf %90, %91 : vector<8x128xf32>
    %cst_9 = arith.constant 0.000000e+00 : f32
    %93 = vector.broadcast %cst_9 : f32 to vector<8x128xf32>
    %94 = arith.maximumf %92, %93 : vector<8x128xf32>
    %95 = vector.broadcast %88 : f32 to vector<8x128xf32>
    %96 = arith.mulf %95, %94 : vector<8x128xf32>
    %97 = arith.addf %85, %96 : vector<8x128xf32>
    %c8 = arith.constant 8 : index
    %98 = memref.load %arg2[%c8] : memref<97xf32, #tpu.memory_space<smem>>
    %c40 = arith.constant 40 : index
    %99 = memref.load %arg2[%c40] : memref<97xf32, #tpu.memory_space<smem>>
    %c72 = arith.constant 72 : index
    %100 = memref.load %arg2[%c72] : memref<97xf32, #tpu.memory_space<smem>>
    %101 = vector.broadcast %98 : f32 to vector<8x128xf32>
    %102 = arith.mulf %101, %0 : vector<8x128xf32>
    %103 = vector.broadcast %99 : f32 to vector<8x128xf32>
    %104 = arith.addf %102, %103 : vector<8x128xf32>
    %cst_10 = arith.constant 0.000000e+00 : f32
    %105 = vector.broadcast %cst_10 : f32 to vector<8x128xf32>
    %106 = arith.maximumf %104, %105 : vector<8x128xf32>
    %107 = vector.broadcast %100 : f32 to vector<8x128xf32>
    %108 = arith.mulf %107, %106 : vector<8x128xf32>
    %109 = arith.addf %97, %108 : vector<8x128xf32>
    %c9 = arith.constant 9 : index
    %110 = memref.load %arg2[%c9] : memref<97xf32, #tpu.memory_space<smem>>
    %c41 = arith.constant 41 : index
    %111 = memref.load %arg2[%c41] : memref<97xf32, #tpu.memory_space<smem>>
    %c73 = arith.constant 73 : index
    %112 = memref.load %arg2[%c73] : memref<97xf32, #tpu.memory_space<smem>>
    %113 = vector.broadcast %110 : f32 to vector<8x128xf32>
    %114 = arith.mulf %113, %0 : vector<8x128xf32>
    %115 = vector.broadcast %111 : f32 to vector<8x128xf32>
    %116 = arith.addf %114, %115 : vector<8x128xf32>
    %cst_11 = arith.constant 0.000000e+00 : f32
    %117 = vector.broadcast %cst_11 : f32 to vector<8x128xf32>
    %118 = arith.maximumf %116, %117 : vector<8x128xf32>
    %119 = vector.broadcast %112 : f32 to vector<8x128xf32>
    %120 = arith.mulf %119, %118 : vector<8x128xf32>
    %121 = arith.addf %109, %120 : vector<8x128xf32>
    %c10 = arith.constant 10 : index
    %122 = memref.load %arg2[%c10] : memref<97xf32, #tpu.memory_space<smem>>
    %c42 = arith.constant 42 : index
    %123 = memref.load %arg2[%c42] : memref<97xf32, #tpu.memory_space<smem>>
    %c74 = arith.constant 74 : index
    %124 = memref.load %arg2[%c74] : memref<97xf32, #tpu.memory_space<smem>>
    %125 = vector.broadcast %122 : f32 to vector<8x128xf32>
    %126 = arith.mulf %125, %0 : vector<8x128xf32>
    %127 = vector.broadcast %123 : f32 to vector<8x128xf32>
    %128 = arith.addf %126, %127 : vector<8x128xf32>
    %cst_12 = arith.constant 0.000000e+00 : f32
    %129 = vector.broadcast %cst_12 : f32 to vector<8x128xf32>
    %130 = arith.maximumf %128, %129 : vector<8x128xf32>
    %131 = vector.broadcast %124 : f32 to vector<8x128xf32>
    %132 = arith.mulf %131, %130 : vector<8x128xf32>
    %133 = arith.addf %121, %132 : vector<8x128xf32>
    %c11 = arith.constant 11 : index
    %134 = memref.load %arg2[%c11] : memref<97xf32, #tpu.memory_space<smem>>
    %c43 = arith.constant 43 : index
    %135 = memref.load %arg2[%c43] : memref<97xf32, #tpu.memory_space<smem>>
    %c75 = arith.constant 75 : index
    %136 = memref.load %arg2[%c75] : memref<97xf32, #tpu.memory_space<smem>>
    %137 = vector.broadcast %134 : f32 to vector<8x128xf32>
    %138 = arith.mulf %137, %0 : vector<8x128xf32>
    %139 = vector.broadcast %135 : f32 to vector<8x128xf32>
    %140 = arith.addf %138, %139 : vector<8x128xf32>
    %cst_13 = arith.constant 0.000000e+00 : f32
    %141 = vector.broadcast %cst_13 : f32 to vector<8x128xf32>
    %142 = arith.maximumf %140, %141 : vector<8x128xf32>
    %143 = vector.broadcast %136 : f32 to vector<8x128xf32>
    %144 = arith.mulf %143, %142 : vector<8x128xf32>
    %145 = arith.addf %133, %144 : vector<8x128xf32>
    %c12 = arith.constant 12 : index
    %146 = memref.load %arg2[%c12] : memref<97xf32, #tpu.memory_space<smem>>
    %c44 = arith.constant 44 : index
    %147 = memref.load %arg2[%c44] : memref<97xf32, #tpu.memory_space<smem>>
    %c76 = arith.constant 76 : index
    %148 = memref.load %arg2[%c76] : memref<97xf32, #tpu.memory_space<smem>>
    %149 = vector.broadcast %146 : f32 to vector<8x128xf32>
    %150 = arith.mulf %149, %0 : vector<8x128xf32>
    %151 = vector.broadcast %147 : f32 to vector<8x128xf32>
    %152 = arith.addf %150, %151 : vector<8x128xf32>
    %cst_14 = arith.constant 0.000000e+00 : f32
    %153 = vector.broadcast %cst_14 : f32 to vector<8x128xf32>
    %154 = arith.maximumf %152, %153 : vector<8x128xf32>
    %155 = vector.broadcast %148 : f32 to vector<8x128xf32>
    %156 = arith.mulf %155, %154 : vector<8x128xf32>
    %157 = arith.addf %145, %156 : vector<8x128xf32>
    %c13 = arith.constant 13 : index
    %158 = memref.load %arg2[%c13] : memref<97xf32, #tpu.memory_space<smem>>
    %c45 = arith.constant 45 : index
    %159 = memref.load %arg2[%c45] : memref<97xf32, #tpu.memory_space<smem>>
    %c77 = arith.constant 77 : index
    %160 = memref.load %arg2[%c77] : memref<97xf32, #tpu.memory_space<smem>>
    %161 = vector.broadcast %158 : f32 to vector<8x128xf32>
    %162 = arith.mulf %161, %0 : vector<8x128xf32>
    %163 = vector.broadcast %159 : f32 to vector<8x128xf32>
    %164 = arith.addf %162, %163 : vector<8x128xf32>
    %cst_15 = arith.constant 0.000000e+00 : f32
    %165 = vector.broadcast %cst_15 : f32 to vector<8x128xf32>
    %166 = arith.maximumf %164, %165 : vector<8x128xf32>
    %167 = vector.broadcast %160 : f32 to vector<8x128xf32>
    %168 = arith.mulf %167, %166 : vector<8x128xf32>
    %169 = arith.addf %157, %168 : vector<8x128xf32>
    %c14 = arith.constant 14 : index
    %170 = memref.load %arg2[%c14] : memref<97xf32, #tpu.memory_space<smem>>
    %c46 = arith.constant 46 : index
    %171 = memref.load %arg2[%c46] : memref<97xf32, #tpu.memory_space<smem>>
    %c78 = arith.constant 78 : index
    %172 = memref.load %arg2[%c78] : memref<97xf32, #tpu.memory_space<smem>>
    %173 = vector.broadcast %170 : f32 to vector<8x128xf32>
    %174 = arith.mulf %173, %0 : vector<8x128xf32>
    %175 = vector.broadcast %171 : f32 to vector<8x128xf32>
    %176 = arith.addf %174, %175 : vector<8x128xf32>
    %cst_16 = arith.constant 0.000000e+00 : f32
    %177 = vector.broadcast %cst_16 : f32 to vector<8x128xf32>
    %178 = arith.maximumf %176, %177 : vector<8x128xf32>
    %179 = vector.broadcast %172 : f32 to vector<8x128xf32>
    %180 = arith.mulf %179, %178 : vector<8x128xf32>
    %181 = arith.addf %169, %180 : vector<8x128xf32>
    %c15 = arith.constant 15 : index
    %182 = memref.load %arg2[%c15] : memref<97xf32, #tpu.memory_space<smem>>
    %c47 = arith.constant 47 : index
    %183 = memref.load %arg2[%c47] : memref<97xf32, #tpu.memory_space<smem>>
    %c79 = arith.constant 79 : index
    %184 = memref.load %arg2[%c79] : memref<97xf32, #tpu.memory_space<smem>>
    %185 = vector.broadcast %182 : f32 to vector<8x128xf32>
    %186 = arith.mulf %185, %0 : vector<8x128xf32>
    %187 = vector.broadcast %183 : f32 to vector<8x128xf32>
    %188 = arith.addf %186, %187 : vector<8x128xf32>
    %cst_17 = arith.constant 0.000000e+00 : f32
    %189 = vector.broadcast %cst_17 : f32 to vector<8x128xf32>
    %190 = arith.maximumf %188, %189 : vector<8x128xf32>
    %191 = vector.broadcast %184 : f32 to vector<8x128xf32>
    %192 = arith.mulf %191, %190 : vector<8x128xf32>
    %193 = arith.addf %181, %192 : vector<8x128xf32>
    %c16 = arith.constant 16 : index
    %194 = memref.load %arg2[%c16] : memref<97xf32, #tpu.memory_space<smem>>
    %c48 = arith.constant 48 : index
    %195 = memref.load %arg2[%c48] : memref<97xf32, #tpu.memory_space<smem>>
    %c80 = arith.constant 80 : index
    %196 = memref.load %arg2[%c80] : memref<97xf32, #tpu.memory_space<smem>>
    %197 = vector.broadcast %194 : f32 to vector<8x128xf32>
    %198 = arith.mulf %197, %0 : vector<8x128xf32>
    %199 = vector.broadcast %195 : f32 to vector<8x128xf32>
    %200 = arith.addf %198, %199 : vector<8x128xf32>
    %cst_18 = arith.constant 0.000000e+00 : f32
    %201 = vector.broadcast %cst_18 : f32 to vector<8x128xf32>
    %202 = arith.maximumf %200, %201 : vector<8x128xf32>
    %203 = vector.broadcast %196 : f32 to vector<8x128xf32>
    %204 = arith.mulf %203, %202 : vector<8x128xf32>
    %205 = arith.addf %193, %204 : vector<8x128xf32>
    %c17 = arith.constant 17 : index
    %206 = memref.load %arg2[%c17] : memref<97xf32, #tpu.memory_space<smem>>
    %c49 = arith.constant 49 : index
    %207 = memref.load %arg2[%c49] : memref<97xf32, #tpu.memory_space<smem>>
    %c81 = arith.constant 81 : index
    %208 = memref.load %arg2[%c81] : memref<97xf32, #tpu.memory_space<smem>>
    %209 = vector.broadcast %206 : f32 to vector<8x128xf32>
    %210 = arith.mulf %209, %0 : vector<8x128xf32>
    %211 = vector.broadcast %207 : f32 to vector<8x128xf32>
    %212 = arith.addf %210, %211 : vector<8x128xf32>
    %cst_19 = arith.constant 0.000000e+00 : f32
    %213 = vector.broadcast %cst_19 : f32 to vector<8x128xf32>
    %214 = arith.maximumf %212, %213 : vector<8x128xf32>
    %215 = vector.broadcast %208 : f32 to vector<8x128xf32>
    %216 = arith.mulf %215, %214 : vector<8x128xf32>
    %217 = arith.addf %205, %216 : vector<8x128xf32>
    %c18 = arith.constant 18 : index
    %218 = memref.load %arg2[%c18] : memref<97xf32, #tpu.memory_space<smem>>
    %c50 = arith.constant 50 : index
    %219 = memref.load %arg2[%c50] : memref<97xf32, #tpu.memory_space<smem>>
    %c82 = arith.constant 82 : index
    %220 = memref.load %arg2[%c82] : memref<97xf32, #tpu.memory_space<smem>>
    %221 = vector.broadcast %218 : f32 to vector<8x128xf32>
    %222 = arith.mulf %221, %0 : vector<8x128xf32>
    %223 = vector.broadcast %219 : f32 to vector<8x128xf32>
    %224 = arith.addf %222, %223 : vector<8x128xf32>
    %cst_20 = arith.constant 0.000000e+00 : f32
    %225 = vector.broadcast %cst_20 : f32 to vector<8x128xf32>
    %226 = arith.maximumf %224, %225 : vector<8x128xf32>
    %227 = vector.broadcast %220 : f32 to vector<8x128xf32>
    %228 = arith.mulf %227, %226 : vector<8x128xf32>
    %229 = arith.addf %217, %228 : vector<8x128xf32>
    %c19 = arith.constant 19 : index
    %230 = memref.load %arg2[%c19] : memref<97xf32, #tpu.memory_space<smem>>
    %c51 = arith.constant 51 : index
    %231 = memref.load %arg2[%c51] : memref<97xf32, #tpu.memory_space<smem>>
    %c83 = arith.constant 83 : index
    %232 = memref.load %arg2[%c83] : memref<97xf32, #tpu.memory_space<smem>>
    %233 = vector.broadcast %230 : f32 to vector<8x128xf32>
    %234 = arith.mulf %233, %0 : vector<8x128xf32>
    %235 = vector.broadcast %231 : f32 to vector<8x128xf32>
    %236 = arith.addf %234, %235 : vector<8x128xf32>
    %cst_21 = arith.constant 0.000000e+00 : f32
    %237 = vector.broadcast %cst_21 : f32 to vector<8x128xf32>
    %238 = arith.maximumf %236, %237 : vector<8x128xf32>
    %239 = vector.broadcast %232 : f32 to vector<8x128xf32>
    %240 = arith.mulf %239, %238 : vector<8x128xf32>
    %241 = arith.addf %229, %240 : vector<8x128xf32>
    %c20 = arith.constant 20 : index
    %242 = memref.load %arg2[%c20] : memref<97xf32, #tpu.memory_space<smem>>
    %c52 = arith.constant 52 : index
    %243 = memref.load %arg2[%c52] : memref<97xf32, #tpu.memory_space<smem>>
    %c84 = arith.constant 84 : index
    %244 = memref.load %arg2[%c84] : memref<97xf32, #tpu.memory_space<smem>>
    %245 = vector.broadcast %242 : f32 to vector<8x128xf32>
    %246 = arith.mulf %245, %0 : vector<8x128xf32>
    %247 = vector.broadcast %243 : f32 to vector<8x128xf32>
    %248 = arith.addf %246, %247 : vector<8x128xf32>
    %cst_22 = arith.constant 0.000000e+00 : f32
    %249 = vector.broadcast %cst_22 : f32 to vector<8x128xf32>
    %250 = arith.maximumf %248, %249 : vector<8x128xf32>
    %251 = vector.broadcast %244 : f32 to vector<8x128xf32>
    %252 = arith.mulf %251, %250 : vector<8x128xf32>
    %253 = arith.addf %241, %252 : vector<8x128xf32>
    %c21 = arith.constant 21 : index
    %254 = memref.load %arg2[%c21] : memref<97xf32, #tpu.memory_space<smem>>
    %c53 = arith.constant 53 : index
    %255 = memref.load %arg2[%c53] : memref<97xf32, #tpu.memory_space<smem>>
    %c85 = arith.constant 85 : index
    %256 = memref.load %arg2[%c85] : memref<97xf32, #tpu.memory_space<smem>>
    %257 = vector.broadcast %254 : f32 to vector<8x128xf32>
    %258 = arith.mulf %257, %0 : vector<8x128xf32>
    %259 = vector.broadcast %255 : f32 to vector<8x128xf32>
    %260 = arith.addf %258, %259 : vector<8x128xf32>
    %cst_23 = arith.constant 0.000000e+00 : f32
    %261 = vector.broadcast %cst_23 : f32 to vector<8x128xf32>
    %262 = arith.maximumf %260, %261 : vector<8x128xf32>
    %263 = vector.broadcast %256 : f32 to vector<8x128xf32>
    %264 = arith.mulf %263, %262 : vector<8x128xf32>
    %265 = arith.addf %253, %264 : vector<8x128xf32>
    %c22 = arith.constant 22 : index
    %266 = memref.load %arg2[%c22] : memref<97xf32, #tpu.memory_space<smem>>
    %c54 = arith.constant 54 : index
    %267 = memref.load %arg2[%c54] : memref<97xf32, #tpu.memory_space<smem>>
    %c86 = arith.constant 86 : index
    %268 = memref.load %arg2[%c86] : memref<97xf32, #tpu.memory_space<smem>>
    %269 = vector.broadcast %266 : f32 to vector<8x128xf32>
    %270 = arith.mulf %269, %0 : vector<8x128xf32>
    %271 = vector.broadcast %267 : f32 to vector<8x128xf32>
    %272 = arith.addf %270, %271 : vector<8x128xf32>
    %cst_24 = arith.constant 0.000000e+00 : f32
    %273 = vector.broadcast %cst_24 : f32 to vector<8x128xf32>
    %274 = arith.maximumf %272, %273 : vector<8x128xf32>
    %275 = vector.broadcast %268 : f32 to vector<8x128xf32>
    %276 = arith.mulf %275, %274 : vector<8x128xf32>
    %277 = arith.addf %265, %276 : vector<8x128xf32>
    %c23 = arith.constant 23 : index
    %278 = memref.load %arg2[%c23] : memref<97xf32, #tpu.memory_space<smem>>
    %c55 = arith.constant 55 : index
    %279 = memref.load %arg2[%c55] : memref<97xf32, #tpu.memory_space<smem>>
    %c87 = arith.constant 87 : index
    %280 = memref.load %arg2[%c87] : memref<97xf32, #tpu.memory_space<smem>>
    %281 = vector.broadcast %278 : f32 to vector<8x128xf32>
    %282 = arith.mulf %281, %0 : vector<8x128xf32>
    %283 = vector.broadcast %279 : f32 to vector<8x128xf32>
    %284 = arith.addf %282, %283 : vector<8x128xf32>
    %cst_25 = arith.constant 0.000000e+00 : f32
    %285 = vector.broadcast %cst_25 : f32 to vector<8x128xf32>
    %286 = arith.maximumf %284, %285 : vector<8x128xf32>
    %287 = vector.broadcast %280 : f32 to vector<8x128xf32>
    %288 = arith.mulf %287, %286 : vector<8x128xf32>
    %289 = arith.addf %277, %288 : vector<8x128xf32>
    %c24 = arith.constant 24 : index
    %290 = memref.load %arg2[%c24] : memref<97xf32, #tpu.memory_space<smem>>
    %c56 = arith.constant 56 : index
    %291 = memref.load %arg2[%c56] : memref<97xf32, #tpu.memory_space<smem>>
    %c88 = arith.constant 88 : index
    %292 = memref.load %arg2[%c88] : memref<97xf32, #tpu.memory_space<smem>>
    %293 = vector.broadcast %290 : f32 to vector<8x128xf32>
    %294 = arith.mulf %293, %0 : vector<8x128xf32>
    %295 = vector.broadcast %291 : f32 to vector<8x128xf32>
    %296 = arith.addf %294, %295 : vector<8x128xf32>
    %cst_26 = arith.constant 0.000000e+00 : f32
    %297 = vector.broadcast %cst_26 : f32 to vector<8x128xf32>
    %298 = arith.maximumf %296, %297 : vector<8x128xf32>
    %299 = vector.broadcast %292 : f32 to vector<8x128xf32>
    %300 = arith.mulf %299, %298 : vector<8x128xf32>
    %301 = arith.addf %289, %300 : vector<8x128xf32>
    %c25 = arith.constant 25 : index
    %302 = memref.load %arg2[%c25] : memref<97xf32, #tpu.memory_space<smem>>
    %c57 = arith.constant 57 : index
    %303 = memref.load %arg2[%c57] : memref<97xf32, #tpu.memory_space<smem>>
    %c89 = arith.constant 89 : index
    %304 = memref.load %arg2[%c89] : memref<97xf32, #tpu.memory_space<smem>>
    %305 = vector.broadcast %302 : f32 to vector<8x128xf32>
    %306 = arith.mulf %305, %0 : vector<8x128xf32>
    %307 = vector.broadcast %303 : f32 to vector<8x128xf32>
    %308 = arith.addf %306, %307 : vector<8x128xf32>
    %cst_27 = arith.constant 0.000000e+00 : f32
    %309 = vector.broadcast %cst_27 : f32 to vector<8x128xf32>
    %310 = arith.maximumf %308, %309 : vector<8x128xf32>
    %311 = vector.broadcast %304 : f32 to vector<8x128xf32>
    %312 = arith.mulf %311, %310 : vector<8x128xf32>
    %313 = arith.addf %301, %312 : vector<8x128xf32>
    %c26 = arith.constant 26 : index
    %314 = memref.load %arg2[%c26] : memref<97xf32, #tpu.memory_space<smem>>
    %c58 = arith.constant 58 : index
    %315 = memref.load %arg2[%c58] : memref<97xf32, #tpu.memory_space<smem>>
    %c90 = arith.constant 90 : index
    %316 = memref.load %arg2[%c90] : memref<97xf32, #tpu.memory_space<smem>>
    %317 = vector.broadcast %314 : f32 to vector<8x128xf32>
    %318 = arith.mulf %317, %0 : vector<8x128xf32>
    %319 = vector.broadcast %315 : f32 to vector<8x128xf32>
    %320 = arith.addf %318, %319 : vector<8x128xf32>
    %cst_28 = arith.constant 0.000000e+00 : f32
    %321 = vector.broadcast %cst_28 : f32 to vector<8x128xf32>
    %322 = arith.maximumf %320, %321 : vector<8x128xf32>
    %323 = vector.broadcast %316 : f32 to vector<8x128xf32>
    %324 = arith.mulf %323, %322 : vector<8x128xf32>
    %325 = arith.addf %313, %324 : vector<8x128xf32>
    %c27 = arith.constant 27 : index
    %326 = memref.load %arg2[%c27] : memref<97xf32, #tpu.memory_space<smem>>
    %c59 = arith.constant 59 : index
    %327 = memref.load %arg2[%c59] : memref<97xf32, #tpu.memory_space<smem>>
    %c91 = arith.constant 91 : index
    %328 = memref.load %arg2[%c91] : memref<97xf32, #tpu.memory_space<smem>>
    %329 = vector.broadcast %326 : f32 to vector<8x128xf32>
    %330 = arith.mulf %329, %0 : vector<8x128xf32>
    %331 = vector.broadcast %327 : f32 to vector<8x128xf32>
    %332 = arith.addf %330, %331 : vector<8x128xf32>
    %cst_29 = arith.constant 0.000000e+00 : f32
    %333 = vector.broadcast %cst_29 : f32 to vector<8x128xf32>
    %334 = arith.maximumf %332, %333 : vector<8x128xf32>
    %335 = vector.broadcast %328 : f32 to vector<8x128xf32>
    %336 = arith.mulf %335, %334 : vector<8x128xf32>
    %337 = arith.addf %325, %336 : vector<8x128xf32>
    %c28 = arith.constant 28 : index
    %338 = memref.load %arg2[%c28] : memref<97xf32, #tpu.memory_space<smem>>
    %c60 = arith.constant 60 : index
    %339 = memref.load %arg2[%c60] : memref<97xf32, #tpu.memory_space<smem>>
    %c92 = arith.constant 92 : index
    %340 = memref.load %arg2[%c92] : memref<97xf32, #tpu.memory_space<smem>>
    %341 = vector.broadcast %338 : f32 to vector<8x128xf32>
    %342 = arith.mulf %341, %0 : vector<8x128xf32>
    %343 = vector.broadcast %339 : f32 to vector<8x128xf32>
    %344 = arith.addf %342, %343 : vector<8x128xf32>
    %cst_30 = arith.constant 0.000000e+00 : f32
    %345 = vector.broadcast %cst_30 : f32 to vector<8x128xf32>
    %346 = arith.maximumf %344, %345 : vector<8x128xf32>
    %347 = vector.broadcast %340 : f32 to vector<8x128xf32>
    %348 = arith.mulf %347, %346 : vector<8x128xf32>
    %349 = arith.addf %337, %348 : vector<8x128xf32>
    %c29 = arith.constant 29 : index
    %350 = memref.load %arg2[%c29] : memref<97xf32, #tpu.memory_space<smem>>
    %c61 = arith.constant 61 : index
    %351 = memref.load %arg2[%c61] : memref<97xf32, #tpu.memory_space<smem>>
    %c93 = arith.constant 93 : index
    %352 = memref.load %arg2[%c93] : memref<97xf32, #tpu.memory_space<smem>>
    %353 = vector.broadcast %350 : f32 to vector<8x128xf32>
    %354 = arith.mulf %353, %0 : vector<8x128xf32>
    %355 = vector.broadcast %351 : f32 to vector<8x128xf32>
    %356 = arith.addf %354, %355 : vector<8x128xf32>
    %cst_31 = arith.constant 0.000000e+00 : f32
    %357 = vector.broadcast %cst_31 : f32 to vector<8x128xf32>
    %358 = arith.maximumf %356, %357 : vector<8x128xf32>
    %359 = vector.broadcast %352 : f32 to vector<8x128xf32>
    %360 = arith.mulf %359, %358 : vector<8x128xf32>
    %361 = arith.addf %349, %360 : vector<8x128xf32>
    %c30 = arith.constant 30 : index
    %362 = memref.load %arg2[%c30] : memref<97xf32, #tpu.memory_space<smem>>
    %c62 = arith.constant 62 : index
    %363 = memref.load %arg2[%c62] : memref<97xf32, #tpu.memory_space<smem>>
    %c94 = arith.constant 94 : index
    %364 = memref.load %arg2[%c94] : memref<97xf32, #tpu.memory_space<smem>>
    %365 = vector.broadcast %362 : f32 to vector<8x128xf32>
    %366 = arith.mulf %365, %0 : vector<8x128xf32>
    %367 = vector.broadcast %363 : f32 to vector<8x128xf32>
    %368 = arith.addf %366, %367 : vector<8x128xf32>
    %cst_32 = arith.constant 0.000000e+00 : f32
    %369 = vector.broadcast %cst_32 : f32 to vector<8x128xf32>
    %370 = arith.maximumf %368, %369 : vector<8x128xf32>
    %371 = vector.broadcast %364 : f32 to vector<8x128xf32>
    %372 = arith.mulf %371, %370 : vector<8x128xf32>
    %373 = arith.addf %361, %372 : vector<8x128xf32>
    %c31 = arith.constant 31 : index
    %374 = memref.load %arg2[%c31] : memref<97xf32, #tpu.memory_space<smem>>
    %c63 = arith.constant 63 : index
    %375 = memref.load %arg2[%c63] : memref<97xf32, #tpu.memory_space<smem>>
    %c95 = arith.constant 95 : index
    %376 = memref.load %arg2[%c95] : memref<97xf32, #tpu.memory_space<smem>>
    %377 = vector.broadcast %374 : f32 to vector<8x128xf32>
    %378 = arith.mulf %377, %0 : vector<8x128xf32>
    %379 = vector.broadcast %375 : f32 to vector<8x128xf32>
    %380 = arith.addf %378, %379 : vector<8x128xf32>
    %cst_33 = arith.constant 0.000000e+00 : f32
    %381 = vector.broadcast %cst_33 : f32 to vector<8x128xf32>
    %382 = arith.maximumf %380, %381 : vector<8x128xf32>
    %383 = vector.broadcast %376 : f32 to vector<8x128xf32>
    %384 = arith.mulf %383, %382 : vector<8x128xf32>
    %385 = arith.addf %373, %384 : vector<8x128xf32>
    %c96 = arith.constant 96 : index
    %386 = memref.load %arg2[%c96] : memref<97xf32, #tpu.memory_space<smem>>
    %387 = vector.broadcast %386 : f32 to vector<8x128xf32>
    %388 = arith.addf %385, %387 : vector<8x128xf32>
    %c0_34 = arith.constant 0 : index
    %c0_35 = arith.constant 0 : index
    %389 = vector.load %arg3[%c0_34, %c0_35] : memref<8x128xf32, #tpu.memory_space<vmem>>, vector<8x128xf32>
    tpu.vector_store %arg3[%c0_34, %c0_35], %388 {strides = array<i32>} : memref<8x128xf32, #tpu.memory_space<vmem>>, vector<8x128xf32>,
    return
  }
  func.func @transform_0(%arg0: i32) -> (i32, i32) {
    %c0_i32 = arith.constant 0 : i32
    %c0_i32_0 = arith.constant 0 : i32
    return %arg0, %c0_i32 : i32, i32
  }
  func.func @transform_1(%arg0: i32) -> i32 {
    %c0_i32 = arith.constant 0 : i32
    %c0_i32_0 = arith.constant 0 : i32
    return %c0_i32 : i32
  }
  func.func @transform_2(%arg0: i32) -> (i32, i32) {
    %c0_i32 = arith.constant 0 : i32
    %c0_i32_0 = arith.constant 0 : i32
    return %arg0, %c0_i32 : i32, i32
  }
}

</mosaic_0001>

<bundles_post_ra>
// kernel: net_forward.1
= control target key start
LH: loop header
LB: loop body
LE: loop exit
PB: predicated region body
PF: predicated region fallthrough
CT: control target
= control target key end

     0   :  { %7 = vsyncpa [#allocation3], 0  ;;  %s497_s12 = smov [#allocation2]   ;;  %s643_s0 = inlined_call_operand.vmem [shape: f32[8,128], index: 0, kind: input, shape index: {}]   ;;  %s644_s1 = inlined_call_operand.vmem [shape: f32[97], index: 1, kind: input, shape index: {}]   ;;  %s645_s2 = inlined_call_operand.vmem [shape: f32[8,128], index: 2, kind: output, shape index: {}]  }
   0x1   :  { %s15_s11 = sshll.u32 %s644_s1, 4  ;;  %s16_s11 = int_to_ptr.vmem [resolvable:$true] %s15_s11 }
   0x2   :  { %18 = dma.vmem_to_smem %s16_s11, 16, %s497_s12, [#allocation3]  }
   0x3   :  { %495 = dma.done.wait [#allocation3], 16  }
   0x4   :  { %496 = vsyncadd [#allocation3], 4294967280 }
   0x5   :  { %23 = sfence }
   0x6   :  { %s25_s13 = sld [smem:[#allocation2]]  ;;  %v519_v0 = vld [vmem:[%s643_s0] sm:$0xff] }
   0x7   :  { %s386_s14 = sld [smem:[#allocation2 + $0x20]] }
   0x8   :  { %s387_s15 = sld [smem:[#allocation2 + $0x40]] }
   0x9   :  { %s388_s16 = sld [smem:[#allocation2 + $0x1]] }
   0xa   :  { %s389_s19 = sld [smem:[#allocation2 + $0x21]] }
   0xb   :  { %s390_s20 = sld [smem:[#allocation2 + $0x41]] }
   0xc   :  { %v28_v1 = vstv %s25_s13  ;;  %s391_s21 = sld [smem:[#allocation2 + $0x2]] }
   0xd   :  { %v29_v2 = vmul.f32 %v28_v1, %v519_v0  ;;  %v30_v3 = vstv %s386_s14  ;;  %s392_s1 = sld [smem:[#allocation2 + $0x22]] }
   0xe   :  { %s522_s22 = sld [smem:[#allocation2 + $0x42]]  ;;  %v33_v9 = vstv %s387_s15 }
   0xf   :  { %v31_v4 = vadd.f32 %v30_v3, %v29_v2  ;;  %v39_v5 = vstv %s388_s16  ;;  %s394_s23 = sld [smem:[#allocation2 + $0x3]] }
  0x10   :  { %v40_v6 = vmul.f32 %v39_v5, %v519_v0  ;;  %v41_v7 = vstv %s389_s19  ;;  %s395_s24 = sld [smem:[#allocation2 + $0x23]] }
  0x11   :  { %v32_v8 = vmax.f32 %v31_v4, 0.0  ;;  %s525_s0 = sld [smem:[#allocation2 + $0x43]]  ;;  %v44_v12 = vstv %s390_s20 }
  0x12   :  { %v42_v10 = vadd.f32 %v41_v7, %v40_v6  ;;  %v50_v11 = vstv %s391_s21  ;;  %s397_s25 = sld [smem:[#allocation2 + $0x4]] }
  0x13   :  { %v51_v13 = vmul.f32 %v50_v11, %v519_v0  ;;  %v52_v14 = vstv %s392_s1  ;;  %s398_s26 = sld [smem:[#allocation2 + $0x24]]  ;;  %v34_v15 = vmul.f32 %v33_v9, %v32_v8 }
  0x14   :  { %v43_v16 = vmax.f32 %v42_v10, 0.0  ;;  %s528_s27 = sld [smem:[#allocation2 + $0x44]]  ;;  %v55_v20 = vstv %s522_s22 }
  0x15   :  { %v53_v17 = vadd.f32 %v52_v14, %v51_v13  ;;  %v61_v18 = vstv %s394_s23  ;;  %s400_s28 = sld [smem:[#allocation2 + $0x5]] }
  0x16   :  { %v45_v19 = vmul.f32 %v44_v12, %v43_v16  ;;  %v62_v21 = vmul.f32 %v61_v18, %v519_v0  ;;  %v63_v22 = vstv %s395_s24  ;;  %s401_s29 = sld [smem:[#allocation2 + $0x25]] }
  0x17   :  { %v54_v23 = vmax.f32 %v53_v17, 0.0  ;;  %s532_s30 = sld [smem:[#allocation2 + $0x45]]  ;;  %v66_v28 = vstv %s525_s0 }
  0x18   :  { %v46_v24 = vadd.f32 %v45_v19, %v34_v15  ;;  %v64_v25 = vadd.f32 %v63_v22, %v62_v21  ;;  %v72_v26 = vstv %s397_s25  ;;  %s403_s3 = sld [smem:[#allocation2 + $0x6]] }
  0x19   :  { %v56_v27 = vmul.f32 %v55_v20, %v54_v23  ;;  %v73_v29 = vmul.f32 %v72_v26, %v519_v0  ;;  %v74_v30 = vstv %s398_s26  ;;  %s404_s4 = sld [smem:[#allocation2 + $0x26]] }
  0x1a   :  { %v65_v31 = vmax.f32 %v64_v25, 0.0  ;;  %s536_s5 = sld [smem:[#allocation2 + $0x46]]  ;;  %v77_v36 = vstv %s528_s27 }
  0x1b   :  { %v57_v32 = vadd.f32 %v56_v27, %v46_v24  ;;  %v75_v33 = vadd.f32 %v74_v30, %v73_v29  ;;  %v83_v34 = vstv %s400_s28  ;;  %s406_s6 = sld [smem:[#allocation2 + $0x7]] }
  0x1c   :  { %v67_v35 = vmul.f32 %v66_v28, %v65_v31  ;;  %v84_v37 = vmul.f32 %v83_v34, %v519_v0  ;;  %v85_v38 = vstv %s401_s29  ;;  %s407_s7 = sld [smem:[#allocation2 + $0x27]] }
  0x1d   :  { %v76_v39 = vmax.f32 %v75_v33, 0.0  ;;  %s540_s8 = sld [smem:[#allocation2 + $0x47]]  ;;  %v88_v44 = vstv %s532_s30 }
  0x1e   :  { %v68_v40 = vadd.f32 %v67_v35, %v57_v32  ;;  %v86_v41 = vadd.f32 %v85_v38, %v84_v37  ;;  %v94_v42 = vstv %s403_s3  ;;  %s409_s9 = sld [smem:[#allocation2 + $0x8]] }
  0x1f   :  { %v78_v43 = vmul.f32 %v77_v36, %v76_v39  ;;  %v95_v45 = vmul.f32 %v94_v42, %v519_v0  ;;  %v96_v46 = vstv %s404_s4  ;;  %s410_s10 = sld [smem:[#allocation2 + $0x28]] }
  0x20   :  { %v87_v47 = vmax.f32 %v86_v41, 0.0  ;;  %s544_s11 = sld [smem:[#allocation2 + $0x48]]  ;;  %v99_v52 = vstv %s536_s5 }
  0x21   :  { %v79_v48 = vadd.f32 %v78_v43, %v68_v40  ;;  %v97_v49 = vadd.f32 %v96_v46, %v95_v45  ;;  %v105_v50 = vstv %s406_s6  ;;  %s412_s12 = sld [smem:[#allocation2 + $0x9]] }
  0x22   :  { %v89_v51 = vmul.f32 %v88_v44, %v87_v47  ;;  %v106_v53 = vmul.f32 %v105_v50, %v519_v0  ;;  %v107_v54 = vstv %s407_s7  ;;  %s413_s13 = sld [smem:[#allocation2 + $0x29]] }
  0x23   :  { %v98_v55 = vmax.f32 %v97_v49, 0.0  ;;  %s548_s14 = sld [smem:[#allocation2 + $0x49]]  ;;  %v110_v60 = vstv %s540_s8 }
  0x24   :  { %v90_v56 = vadd.f32 %v89_v51, %v79_v48  ;;  %v108_v57 = vadd.f32 %v107_v54, %v106_v53  ;;  %v116_v58 = vstv %s409_s9  ;;  %s415_s15 = sld [smem:[#allocation2 + $0xa]] }
  0x25   :  { %v100_v59 = vmul.f32 %v99_v52, %v98_v55  ;;  %v117_v61 = vmul.f32 %v116_v58, %v519_v0  ;;  %v118_v62 = vstv %s410_s10  ;;  %s416_s16 = sld [smem:[#allocation2 + $0x2a]] }
  0x26   :  { %v109_v63 = vmax.f32 %v108_v57, 0.0  ;;  %s552_s17 = sld [smem:[#allocation2 + $0x4a]]  ;;  %v121_v5 = vstv %s544_s11 }
  0x27   :  { %v101_v1 = vadd.f32 %v100_v59, %v90_v56  ;;  %v119_v2 = vadd.f32 %v118_v62, %v117_v61  ;;  %v127_v3 = vstv %s412_s12  ;;  %s418_s18 = sld [smem:[#allocation2 + $0xb]] }
  0x28   :  { %v111_v4 = vmul.f32 %v110_v60, %v109_v63  ;;  %v128_v6 = vmul.f32 %v127_v3, %v519_v0  ;;  %v129_v7 = vstv %s413_s13  ;;  %s419_s19 = sld [smem:[#allocation2 + $0x2b]] }
  0x29   :  { %v120_v8 = vmax.f32 %v119_v2, 0.0  ;;  %s556_s20 = sld [smem:[#allocation2 + $0x4b]]  ;;  %v132_v13 = vstv %s548_s14 }
  0x2a   :  { %v112_v9 = vadd.f32 %v111_v4, %v101_v1  ;;  %v130_v10 = vadd.f32 %v129_v7, %v128_v6  ;;  %v138_v11 = vstv %s415_s15  ;;  %s421_s21 = sld [smem:[#allocation2 + $0xc]] }
  0x2b   :  { %v122_v12 = vmul.f32 %v121_v5, %v120_v8  ;;  %v139_v14 = vmul.f32 %v138_v11, %v519_v0  ;;  %v140_v15 = vstv %s416_s16  ;;  %s422_s1 = sld [smem:[#allocation2 + $0x2c]] }
  0x2c   :  { %v131_v16 = vmax.f32 %v130_v10, 0.0  ;;  %s560_s22 = sld [smem:[#allocation2 + $0x4c]]  ;;  %v143_v21 = vstv %s552_s17 }
  0x2d   :  { %v123_v17 = vadd.f32 %v122_v12, %v112_v9  ;;  %v141_v18 = vadd.f32 %v140_v15, %v139_v14  ;;  %v149_v19 = vstv %s418_s18  ;;  %s424_s23 = sld [smem:[#allocation2 + $0xd]] }
  0x2e   :  { %v133_v20 = vmul.f32 %v132_v13, %v131_v16  ;;  %v150_v22 = vmul.f32 %v149_v19, %v519_v0  ;;  %v151_v23 = vstv %s419_s19  ;;  %s425_s24 = sld [smem:[#allocation2 + $0x2d]] }
  0x2f   :  { %v142_v24 = vmax.f32 %v141_v18, 0.0  ;;  %s564_s0 = sld [smem:[#allocation2 + $0x4d]]  ;;  %v154_v29 = vstv %s556_s20 }
  0x30   :  { %v134_v25 = vadd.f32 %v133_v20, %v123_v17  ;;  %v152_v26 = vadd.f32 %v151_v23, %v150_v22  ;;  %v160_v27 = vstv %s421_s21  ;;  %s427_s25 = sld [smem:[#allocation2 + $0xe]] }
  0x31   :  { %v144_v28 = vmul.f32 %v143_v21, %v142_v24  ;;  %v161_v30 = vmul.f32 %v160_v27, %v519_v0  ;;  %v162_v31 = vstv %s422_s1  ;;  %s428_s26 = sld [smem:[#allocation2 + $0x2e]] }
  0x32   :  { %v153_v32 = vmax.f32 %v152_v26, 0.0  ;;  %s568_s27 = sld [smem:[#allocation2 + $0x4e]]  ;;  %v165_v37 = vstv %s560_s22 }
  0x33   :  { %v145_v33 = vadd.f32 %v144_v28, %v134_v25  ;;  %v163_v34 = vadd.f32 %v162_v31, %v161_v30  ;;  %v171_v35 = vstv %s424_s23  ;;  %s430_s28 = sld [smem:[#allocation2 + $0xf]] }
  0x34   :  { %v155_v36 = vmul.f32 %v154_v29, %v153_v32  ;;  %v172_v38 = vmul.f32 %v171_v35, %v519_v0  ;;  %v173_v39 = vstv %s425_s24  ;;  %s431_s29 = sld [smem:[#allocation2 + $0x2f]] }
  0x35   :  { %v164_v40 = vmax.f32 %v163_v34, 0.0  ;;  %s572_s30 = sld [smem:[#allocation2 + $0x4f]]  ;;  %v176_v45 = vstv %s564_s0 }
  0x36   :  { %v156_v41 = vadd.f32 %v155_v36, %v145_v33  ;;  %v174_v42 = vadd.f32 %v173_v39, %v172_v38  ;;  %v182_v43 = vstv %s427_s25  ;;  %s433_s3 = sld [smem:[#allocation2 + $0x10]] }
  0x37   :  { %v166_v44 = vmul.f32 %v165_v37, %v164_v40  ;;  %v183_v46 = vmul.f32 %v182_v43, %v519_v0  ;;  %v184_v47 = vstv %s428_s26  ;;  %s434_s4 = sld [smem:[#allocation2 + $0x30]] }
  0x38   :  { %v175_v48 = vmax.f32 %v174_v42, 0.0  ;;  %s576_s5 = sld [smem:[#allocation2 + $0x50]]  ;;  %v187_v53 = vstv %s568_s27 }
  0x39   :  { %v167_v49 = vadd.f32 %v166_v44, %v156_v41  ;;  %v185_v50 = vadd.f32 %v184_v47, %v183_v46  ;;  %v193_v51 = vstv %s430_s28  ;;  %s436_s6 = sld [smem:[#allocation2 + $0x11]] }
  0x3a   :  { %v177_v52 = vmul.f32 %v176_v45, %v175_v48  ;;  %v194_v54 = vmul.f32 %v193_v51, %v519_v0  ;;  %v195_v55 = vstv %s431_s29  ;;  %s437_s7 = sld [smem:[#allocation2 + $0x31]] }
  0x3b   :  { %v186_v56 = vmax.f32 %v185_v50, 0.0  ;;  %s580_s8 = sld [smem:[#allocation2 + $0x51]]  ;;  %v198_v61 = vstv %s572_s30 }
  0x3c   :  { %v178_v57 = vadd.f32 %v177_v52, %v167_v49  ;;  %v196_v58 = vadd.f32 %v195_v55, %v194_v54  ;;  %v204_v59 = vstv %s433_s3  ;;  %s439_s9 = sld [smem:[#allocation2 + $0x12]] }
  0x3d   :  { %v188_v60 = vmul.f32 %v187_v53, %v186_v56  ;;  %v205_v62 = vmul.f32 %v204_v59, %v519_v0  ;;  %v206_v63 = vstv %s434_s4  ;;  %s440_s10 = sld [smem:[#allocation2 + $0x32]] }
  0x3e   :  { %v197_v1 = vmax.f32 %v196_v58, 0.0  ;;  %s584_s11 = sld [smem:[#allocation2 + $0x52]]  ;;  %v209_v6 = vstv %s576_s5 }
  0x3f   :  { %v189_v2 = vadd.f32 %v188_v60, %v178_v57  ;;  %v207_v3 = vadd.f32 %v206_v63, %v205_v62  ;;  %v215_v4 = vstv %s436_s6  ;;  %s442_s12 = sld [smem:[#allocation2 + $0x13]] }
  0x40   :  { %v199_v5 = vmul.f32 %v198_v61, %v197_v1  ;;  %v216_v7 = vmul.f32 %v215_v4, %v519_v0  ;;  %v217_v8 = vstv %s437_s7  ;;  %s443_s13 = sld [smem:[#allocation2 + $0x33]] }
  0x41   :  { %v208_v9 = vmax.f32 %v207_v3, 0.0  ;;  %s588_s14 = sld [smem:[#allocation2 + $0x53]]  ;;  %v220_v14 = vstv %s580_s8 }
  0x42   :  { %v200_v10 = vadd.f32 %v199_v5, %v189_v2  ;;  %v218_v11 = vadd.f32 %v217_v8, %v216_v7  ;;  %v226_v12 = vstv %s439_s9  ;;  %s445_s15 = sld [smem:[#allocation2 + $0x14]] }
  0x43   :  { %v210_v13 = vmul.f32 %v209_v6, %v208_v9  ;;  %v227_v15 = vmul.f32 %v226_v12, %v519_v0  ;;  %v228_v16 = vstv %s440_s10  ;;  %s446_s16 = sld [smem:[#allocation2 + $0x34]] }
  0x44   :  { %v219_v17 = vmax.f32 %v218_v11, 0.0  ;;  %s592_s17 = sld [smem:[#allocation2 + $0x54]]  ;;  %v231_v22 = vstv %s584_s11 }
  0x45   :  { %v211_v18 = vadd.f32 %v210_v13, %v200_v10  ;;  %v229_v19 = vadd.f32 %v228_v16, %v227_v15  ;;  %v237_v20 = vstv %s442_s12  ;;  %s448_s18 = sld [smem:[#allocation2 + $0x15]] }
  0x46   :  { %v221_v21 = vmul.f32 %v220_v14, %v219_v17  ;;  %v238_v23 = vmul.f32 %v237_v20, %v519_v0  ;;  %v239_v24 = vstv %s443_s13  ;;  %s449_s19 = sld [smem:[#allocation2 + $0x35]] }
  0x47   :  { %v230_v25 = vmax.f32 %v229_v19, 0.0  ;;  %s596_s20 = sld [smem:[#allocation2 + $0x55]]  ;;  %v242_v30 = vstv %s588_s14 }
  0x48   :  { %v222_v26 = vadd.f32 %v221_v21, %v211_v18  ;;  %v240_v27 = vadd.f32 %v239_v24, %v238_v23  ;;  %v248_v28 = vstv %s445_s15  ;;  %s451_s21 = sld [smem:[#allocation2 + $0x16]] }
  0x49   :  { %v232_v29 = vmul.f32 %v231_v22, %v230_v25  ;;  %v249_v31 = vmul.f32 %v248_v28, %v519_v0  ;;  %v250_v32 = vstv %s446_s16  ;;  %s452_s1 = sld [smem:[#allocation2 + $0x36]] }
  0x4a   :  { %v241_v33 = vmax.f32 %v240_v27, 0.0  ;;  %s600_s22 = sld [smem:[#allocation2 + $0x56]]  ;;  %v253_v38 = vstv %s592_s17 }
  0x4b   :  { %v233_v34 = vadd.f32 %v232_v29, %v222_v26  ;;  %v251_v35 = vadd.f32 %v250_v32, %v249_v31  ;;  %v259_v36 = vstv %s448_s18  ;;  %s454_s23 = sld [smem:[#allocation2 + $0x17]] }
  0x4c   :  { %v243_v37 = vmul.f32 %v242_v30, %v241_v33  ;;  %v260_v39 = vmul.f32 %v259_v36, %v519_v0  ;;  %v261_v40 = vstv %s449_s19  ;;  %s455_s24 = sld [smem:[#allocation2 + $0x37]] }
  0x4d   :  { %v252_v41 = vmax.f32 %v251_v35, 0.0  ;;  %s604_s0 = sld [smem:[#allocation2 + $0x57]]  ;;  %v264_v46 = vstv %s596_s20 }
  0x4e   :  { %v244_v42 = vadd.f32 %v243_v37, %v233_v34  ;;  %v262_v43 = vadd.f32 %v261_v40, %v260_v39  ;;  %v270_v44 = vstv %s451_s21  ;;  %s457_s25 = sld [smem:[#allocation2 + $0x18]] }
  0x4f   :  { %v254_v45 = vmul.f32 %v253_v38, %v252_v41  ;;  %v271_v47 = vmul.f32 %v270_v44, %v519_v0  ;;  %v272_v48 = vstv %s452_s1  ;;  %s458_s26 = sld [smem:[#allocation2 + $0x38]] }
  0x50   :  { %v263_v49 = vmax.f32 %v262_v43, 0.0  ;;  %s608_s27 = sld [smem:[#allocation2 + $0x58]]  ;;  %v275_v54 = vstv %s600_s22 }
  0x51   :  { %v255_v50 = vadd.f32 %v254_v45, %v244_v42  ;;  %v273_v51 = vadd.f32 %v272_v48, %v271_v47  ;;  %v281_v52 = vstv %s454_s23  ;;  %s460_s28 = sld [smem:[#allocation2 + $0x19]] }
  0x52   :  { %v265_v53 = vmul.f32 %v264_v46, %v263_v49  ;;  %v282_v55 = vmul.f32 %v281_v52, %v519_v0  ;;  %v283_v56 = vstv %s455_s24  ;;  %s461_s29 = sld [smem:[#allocation2 + $0x39]] }
  0x53   :  { %v274_v57 = vmax.f32 %v273_v51, 0.0  ;;  %s612_s30 = sld [smem:[#allocation2 + $0x59]]  ;;  %v286_v62 = vstv %s604_s0 }
  0x54   :  { %v266_v58 = vadd.f32 %v265_v53, %v255_v50  ;;  %v284_v59 = vadd.f32 %v283_v56, %v282_v55  ;;  %v292_v60 = vstv %s457_s25  ;;  %s463_s3 = sld [smem:[#allocation2 + $0x1a]] }
  0x55   :  { %v276_v61 = vmul.f32 %v275_v54, %v274_v57  ;;  %v293_v63 = vmul.f32 %v292_v60, %v519_v0  ;;  %v294_v1 = vstv %s458_s26  ;;  %s464_s4 = sld [smem:[#allocation2 + $0x3a]] }
  0x56   :  { %v285_v2 = vmax.f32 %v284_v59, 0.0  ;;  %s616_s5 = sld [smem:[#allocation2 + $0x5a]]  ;;  %v297_v7 = vstv %s608_s27 }
  0x57   :  { %v277_v3 = vadd.f32 %v276_v61, %v266_v58  ;;  %v295_v4 = vadd.f32 %v294_v1, %v293_v63  ;;  %v303_v5 = vstv %s460_s28  ;;  %s466_s6 = sld [smem:[#allocation2 + $0x1b]] }
  0x58   :  { %v287_v6 = vmul.f32 %v286_v62, %v285_v2  ;;  %v304_v8 = vmul.f32 %v303_v5, %v519_v0  ;;  %v305_v9 = vstv %s461_s29  ;;  %s467_s7 = sld [smem:[#allocation2 + $0x3b]] }
  0x59   :  { %v296_v10 = vmax.f32 %v295_v4, 0.0  ;;  %s620_s8 = sld [smem:[#allocation2 + $0x5b]]  ;;  %v308_v15 = vstv %s612_s30 }
  0x5a   :  { %v288_v11 = vadd.f32 %v287_v6, %v277_v3  ;;  %v306_v12 = vadd.f32 %v305_v9, %v304_v8  ;;  %v314_v13 = vstv %s463_s3  ;;  %s469_s9 = sld [smem:[#allocation2 + $0x1c]] }
  0x5b   :  { %v298_v14 = vmul.f32 %v297_v7, %v296_v10  ;;  %v315_v16 = vmul.f32 %v314_v13, %v519_v0  ;;  %v316_v17 = vstv %s464_s4  ;;  %s470_s10 = sld [smem:[#allocation2 + $0x3c]] }
  0x5c   :  { %v307_v18 = vmax.f32 %v306_v12, 0.0  ;;  %s624_s11 = sld [smem:[#allocation2 + $0x5c]]  ;;  %v319_v23 = vstv %s616_s5 }
  0x5d   :  { %v299_v19 = vadd.f32 %v298_v14, %v288_v11  ;;  %v317_v20 = vadd.f32 %v316_v17, %v315_v16  ;;  %v325_v21 = vstv %s466_s6  ;;  %s472_s12 = sld [smem:[#allocation2 + $0x1d]] }
  0x5e   :  { %v309_v22 = vmul.f32 %v308_v15, %v307_v18  ;;  %v326_v24 = vmul.f32 %v325_v21, %v519_v0  ;;  %v327_v25 = vstv %s467_s7  ;;  %s473_s13 = sld [smem:[#allocation2 + $0x3d]] }
  0x5f   :  { %v318_v26 = vmax.f32 %v317_v20, 0.0  ;;  %s628_s14 = sld [smem:[#allocation2 + $0x5d]]  ;;  %v330_v31 = vstv %s620_s8 }
  0x60   :  { %v310_v27 = vadd.f32 %v309_v22, %v299_v19  ;;  %v328_v28 = vadd.f32 %v327_v25, %v326_v24  ;;  %v336_v29 = vstv %s469_s9  ;;  %s475_s15 = sld [smem:[#allocation2 + $0x1e]] }
  0x61   :  { %v320_v30 = vmul.f32 %v319_v23, %v318_v26  ;;  %v337_v32 = vmul.f32 %v336_v29, %v519_v0  ;;  %v338_v33 = vstv %s470_s10  ;;  %s476_s16 = sld [smem:[#allocation2 + $0x3e]] }
  0x62   :  { %v329_v34 = vmax.f32 %v328_v28, 0.0  ;;  %s632_s17 = sld [smem:[#allocation2 + $0x5e]]  ;;  %v341_v39 = vstv %s624_s11 }
  0x63   :  { %v321_v35 = vadd.f32 %v320_v30, %v310_v27  ;;  %v339_v36 = vadd.f32 %v338_v33, %v337_v32  ;;  %v347_v37 = vstv %s472_s12  ;;  %s478_s18 = sld [smem:[#allocation2 + $0x1f]] }
  0x64   :  { %v331_v38 = vmul.f32 %v330_v31, %v329_v34  ;;  %v348_v40 = vmul.f32 %v347_v37, %v519_v0  ;;  %v349_v41 = vstv %s473_s13  ;;  %s479_s19 = sld [smem:[#allocation2 + $0x3f]] }
  0x65   :  { %v340_v42 = vmax.f32 %v339_v36, 0.0  ;;  %s480_s20 = sld [smem:[#allocation2 + $0x5f]]  ;;  %v352_v47 = vstv %s628_s14 }
  0x66   :  { %v332_v43 = vadd.f32 %v331_v38, %v321_v35  ;;  %v350_v44 = vadd.f32 %v349_v41, %v348_v40  ;;  %v358_v45 = vstv %s475_s15  ;;  %s481_s21 = sld [smem:[#allocation2 + $0x60]] }
  0x67   :  { %v342_v46 = vmul.f32 %v341_v39, %v340_v42  ;;  %v359_v48 = vmul.f32 %v358_v45, %v519_v0  ;;  %v360_v49 = vstv %s476_s16 }
  0x68   :  { %v351_v50 = vmax.f32 %v350_v44, 0.0  ;;  %v363_v55 = vstv %s632_s17 }
  0x69   :  { %v343_v51 = vadd.f32 %v342_v46, %v332_v43  ;;  %v361_v52 = vadd.f32 %v360_v49, %v359_v48  ;;  %v369_v53 = vstv %s478_s18 }
  0x6a   :  { %v353_v54 = vmul.f32 %v352_v47, %v351_v50  ;;  %v370_v56 = vmul.f32 %v369_v53, %v519_v0  ;;  %v371_v57 = vstv %s479_s19 }
  0x6b   :  { %v362_v58 = vmax.f32 %v361_v52, 0.0  ;;  %v374_v62 = vstv %s480_s20 }
  0x6c   :  { %v354_v59 = vadd.f32 %v353_v54, %v343_v51  ;;  %v372_v60 = vadd.f32 %v371_v57, %v370_v56  ;;  %v378_v3 = vstv %s481_s21 }
  0x6d   :  { %v364_v61 = vmul.f32 %v363_v55, %v362_v58 }
  0x6e   :  { %v373_v63 = vmax.f32 %v372_v60, 0.0 }
  0x6f   :  { %v365_v1 = vadd.f32 %v364_v61, %v354_v59 }
  0x70   :  { %v375_v2 = vmul.f32 %v374_v62, %v373_v63 }
  0x72   :  { %v376_v4 = vadd.f32 %v375_v2, %v365_v1 }
  0x74   :  { %v379_v5 = vadd.f32 %v378_v3, %v376_v4 }
  0x76   :  { %380 = vst [vmem:[%s645_s2] sm:$0xff] %v379_v5 }
  0x77   :  { %385 = vsyncpa [#allocation3], 1 }

</bundles_post_ra>
